<compile_context>
chip_gen: v6e
topology: v6e:2x2x1
jax: 0.10.0
libtpu: 0.0.40
codegen_flags: <defaults>
</compile_context>

<pallas_src>
import jax
import jax.numpy as jnp
from jax.experimental import pallas as pl
from jax.experimental.pallas import tpu as pltpu


def fasttext_kernel(scored_ref, mask_ref, bias_ref, out_ref):
    """Masked mean over the sequence axis + fused bias + sigmoid.

    scored_ref: [L, TILE_B] f32  fused per-token scores, token_scores[ids].T
    mask_ref:   [L, TILE_B] f32  attention mask (1 = real token, 0 = padding)
    bias_ref:   [1]         f32  fused scalar bias (SMEM)
    out_ref:    [1, TILE_B] f32  lane-dense probabilities
    """
    scored = scored_ref[...]                                   # [L, TILE_B]
    mask = mask_ref[...]                                       # [L, TILE_B]

    num = jnp.sum(scored * mask, axis=0, keepdims=True)        # [1, TILE_B]
    den = jnp.sum(mask, axis=0, keepdims=True)                 # [1, TILE_B]
    safe = jnp.where(den > 0.0, den, 1.0)                      # empty bag -> 0

    logit = num / safe + bias_ref[0]                           # exact divide
    out_ref[...] = jax.nn.sigmoid(logit)                       # wide, unmasked vst


def fasttext_forward(ids, attention_mask, emb_table, w1, b1, w2, b2,
                     *, tile_b=1024):
    """ids: [B, L] int32, attention_mask: [B, L] 0/1.
    Linear weights are stored pre-transposed: w1 [D, H], w2 [H, 1].
    Returns sigmoid probabilities of shape [B]."""
    B, L = ids.shape
    V, D = emb_table.shape

    # ---- offline algebraic fusion (tiny XLA ops, done once) ----
    w_fused = w1 @ w2                                            # [D, 1]
    b_fused = (b1 @ w2 + b2).reshape(1).astype(jnp.float32)      # [1]
    token_scores = (emb_table @ w_fused)[:, 0].astype(jnp.float32)  # [V]

    # ---- XLA-side scalar gather of the fused scores (4*B*L bytes) ----
    scored = jnp.take(token_scores, ids.astype(jnp.int32), axis=0)  # [B, L]

    # ---- pad batch to a lane multiple; batch on the lane axis ----
    # Clamp tile_b for tiny batches; for v7x keep tile_b <= B_pad/2 on real
    # batches so the "parallel" axis uses both TensorCores.
    tile_b = min(tile_b, pl.cdiv(B, 128) * 128)
    B_pad = pl.cdiv(B, tile_b) * tile_b
    nb = B_pad // tile_b

    scored_t = jnp.zeros((L, B_pad), jnp.float32).at[:, :B].set(
        scored.astype(jnp.float32).T)
    mask_t = jnp.zeros((L, B_pad), jnp.float32).at[:, :B].set(
        attention_mask.astype(jnp.float32).T)

    out = pl.pallas_call(
        fasttext_kernel,
        out_shape=jax.ShapeDtypeStruct((1, B_pad), jnp.float32),
        grid=(nb,),
        in_specs=[
            pl.BlockSpec((L, tile_b), lambda i: (0, i)),           # scored
            pl.BlockSpec((L, tile_b), lambda i: (0, i)),           # mask
            pl.BlockSpec(memory_space=pltpu.MemorySpace.SMEM),     # fused bias
        ],
        out_specs=pl.BlockSpec((1, tile_b), lambda i: (0, i)),     # lane-dense
        compiler_params=pltpu.CompilerParams(
            dimension_semantics=("parallel",)),
    )(scored_t, mask_t, b_fused)

    # torch .squeeze() returns a 0-d tensor for B == 1; we always return [B].
    return out[0, :B]


def reference_forward(ids, attention_mask, emb_table, w1, b1, w2, b2):
    """Plain-JAX reference matching the original (unfused) PyTorch math."""
    mask_f = attention_mask.astype(jnp.float32)
    gathered = emb_table[ids]                                   # [B, L, D]
    summed = jnp.sum(gathered * mask_f[:, :, None], axis=1)     # [B, D]
    denom = jnp.sum(mask_f, axis=1, keepdims=True)
    embedded = summed / jnp.where(denom > 0, denom, 1.0)
    pre = embedded @ w1 + b1
    logits = pre @ w2 + b2
    return jax.nn.sigmoid(logits).squeeze(-1)


if __name__ == "__main__":
    # Small synthetic shapes consistent with the module:
    #   bag_hidden_dimension D=128, fc_hidden_dimension H=64,
    #   toy vocab V=300, batch B=2, seq L=8 (<= MAX_LEN=256).
    B, L, V, D, H = 2, 8, 300, 128, 64

    key = jax.random.PRNGKey(0)
    k_ids, k_emb, k_w1, k_b1, k_w2, k_b2 = jax.random.split(key, 6)

    ids = jax.random.randint(k_ids, (B, L), 0, V, dtype=jnp.int32)
    lengths = jnp.array([5, 7], dtype=jnp.int32)
    attention_mask = (jnp.arange(L)[None, :] < lengths[:, None]).astype(jnp.int32)

    emb_table = jax.random.uniform(k_emb, (V, D), jnp.float32, -0.5, 0.5)
    # Linear weights stored as [in, out] (transposed vs. PyTorch's [out, in]).
    w1 = jax.random.normal(k_w1, (D, H), jnp.float32) * 0.05
    b1 = jax.random.normal(k_b1, (H,), jnp.float32) * 0.01
    w2 = jax.random.normal(k_w2, (H, 1), jnp.float32) * 0.05
    b2 = jax.random.normal(k_b2, (1,), jnp.float32) * 0.01

    out = fasttext_forward(ids, attention_mask, emb_table, w1, b1, w2, b2)
    out = jax.block_until_ready(out)

    ref = reference_forward(ids, attention_mask, emb_table, w1, b1, w2, b2)
    assert out.shape == (B,), out.shape
    # Offline fusion reorders the (exact-in-real-arithmetic) f32 matmuls, so
    # only tiny rounding differences vs the sequential reference remain.
    assert jnp.allclose(out, ref, atol=1e-5, rtol=1e-5), (out, ref)

    print("KERNEL_OK")
</pallas_src>

<mosaic_0001>
module attributes {stable_mosaic.version = 11 : i64} {
  func.func @fasttext_kernel(%arg0: i32, %arg1: memref<8x128xf32, #tpu.memory_space<vmem>>, %arg2: memref<8x128xf32, #tpu.memory_space<vmem>>, %arg3: memref<1xf32, #tpu.memory_space<smem>>, %arg4: memref<1x128xf32, #tpu.memory_space<vmem>>) attributes {dimension_semantics = [#tpu.dimension_semantics<parallel>], iteration_bounds = array<i64: 1>, scalar_prefetch = 0 : i64, scratch_operands = 0 : i64, tpu.core_type = #tpu.core_type<tc>, window_params = [{transform_indices = @transform_0, window_bounds = array<i64: 8, 128>}, {transform_indices = @transform_1, window_bounds = array<i64: 8, 128>}, {transform_indices = @transform_2, window_bounds = array<i64: 1>}, {transform_indices = @transform_3, window_bounds = array<i64: 1, 128>}]} {
    %c0 = arith.constant 0 : index
    %c0_0 = arith.constant 0 : index
    %0 = vector.load %arg1[%c0, %c0_0] : memref<8x128xf32, #tpu.memory_space<vmem>>, vector<8x128xf32>
    %c0_1 = arith.constant 0 : index
    %c0_2 = arith.constant 0 : index
    %1 = vector.load %arg2[%c0_1, %c0_2] : memref<8x128xf32, #tpu.memory_space<vmem>>, vector<8x128xf32>
    %2 = arith.mulf %0, %1 : vector<8x128xf32>
    %cst = arith.constant dense<0.000000e+00> : vector<128xf32>
    %3 = vector.multi_reduction <add>, %2, %cst [0] : vector<8x128xf32> to vector<128xf32>
    %4 = vector.shape_cast %3 : vector<128xf32> to vector<1x128xf32>
    %cst_3 = arith.constant dense<0.000000e+00> : vector<128xf32>
    %5 = vector.multi_reduction <add>, %1, %cst_3 [0] : vector<8x128xf32> to vector<128xf32>
    %6 = vector.shape_cast %5 : vector<128xf32> to vector<1x128xf32>
    %cst_4 = arith.constant 0.000000e+00 : f32
    %7 = vector.broadcast %cst_4 : f32 to vector<1x128xf32>
    %8 = arith.cmpf ogt, %6, %7 : vector<1x128xf32>
    %cst_5 = arith.constant 1.000000e+00 : f32
    %9 = vector.broadcast %cst_5 : f32 to vector<1x128xf32>
    %10 = arith.select %8, %6, %9 : vector<1x128xi1>, vector<1x128xf32>
    %11 = arith.divf %4, %10 : vector<1x128xf32>
    %c0_6 = arith.constant 0 : index
    %12 = memref.load %arg3[%c0_6] : memref<1xf32, #tpu.memory_space<smem>>
    %13 = vector.broadcast %12 : f32 to vector<1x128xf32>
    %14 = arith.addf %11, %13 : vector<1x128xf32>
    %15 = arith.negf %14 : vector<1x128xf32>
    %16 = math.exp %15 : vector<1x128xf32>
    %cst_7 = arith.constant 1.000000e+00 : f32
    %17 = vector.broadcast %cst_7 : f32 to vector<1x128xf32>
    %18 = arith.addf %17, %16 : vector<1x128xf32>
    %19 = arith.divf %17, %18 : vector<1x128xf32>
    %c0_8 = arith.constant 0 : index
    %c0_9 = arith.constant 0 : index
    %20 = vector.load %arg4[%c0_8, %c0_9] : memref<1x128xf32, #tpu.memory_space<vmem>>, vector<1x128xf32>
    tpu.vector_store %arg4[%c0_8, %c0_9], %19 {strides = array<i32>} : memref<1x128xf32, #tpu.memory_space<vmem>>, vector<1x128xf32>,
    return
  }
  func.func @transform_0(%arg0: i32) -> (i32, i32) {
    %c0_i32 = arith.constant 0 : i32
    %c0_i32_0 = arith.constant 0 : i32
    return %c0_i32, %arg0 : i32, i32
  }
  func.func @transform_1(%arg0: i32) -> (i32, i32) {
    %c0_i32 = arith.constant 0 : i32
    %c0_i32_0 = arith.constant 0 : i32
    return %c0_i32, %arg0 : i32, i32
  }
  func.func @transform_2(%arg0: i32) -> i32 {
    %c0_i32 = arith.constant 0 : i32
    %c0_i32_0 = arith.constant 0 : i32
    return %c0_i32 : i32
  }
  func.func @transform_3(%arg0: i32) -> (i32, i32) {
    %c0_i32 = arith.constant 0 : i32
    %c0_i32_0 = arith.constant 0 : i32
    return %c0_i32, %arg0 : i32, i32
  }
}

</mosaic_0001>

<bundles_post_ra>
// kernel: tpu_custom_call.1
= control target key start
LH: loop header
LB: loop body
LE: loop exit
PB: predicated region body
PF: predicated region fallthrough
CT: control target
= control target key end

     0   :  { %9 = vsyncpa [#allocation4], 0  ;;  %s196_s0 = inlined_call_operand.hbm [shape: f32[8,128], index: 0, kind: input, shape index: {}]   ;;  %s197_s1 = inlined_call_operand.hbm [shape: f32[8,128], index: 1, kind: input, shape index: {}]   ;;  %s198_s2 = inlined_call_operand.<no memory space> [shape: f32[1], index: 2, kind: input, shape index: {}]   ;;  %s199_s3 = inlined_call_operand.hbm [shape: f32[1,128], index: 3, kind: output, shape index: {}]  }
   0x1   :  { %10 = vsyncpa [#allocation7], 0 }
   0x2   :  { %11 = vsyncpa [#allocation5], 0  ;;  %s161_s12 = smov [#allocation3]   ;;  %s162_s14 = smov [#allocation6]  }
   0x3   :  { %s18_s13 = sshll.u32 %s161_s12, 4  ;;  %s28_s15 = sshll.u32 %s162_s14, 4  ;;  %s19_s13 = int_to_ptr.vmem [resolvable:$true] %s18_s13  ;;  %s29_s15 = int_to_ptr.vmem [resolvable:$true] %s28_s15 }
   0x4   :  { %s103_s16 = scalar_lea.vmem %s19_s13, 128  ;;  %p108_p1 = scmp.lt.s32.totalorder %s19_s13, %s19_s13 }
   0x5   :  { %p104_p0 = scmp.ne.s32.totalorder %s19_s13, %s103_s16  ;;  %p109_p2 = scmp.lt.s32.totalorder %s103_s16, %s103_s16 }
   0x7   :  { %p110_p3 = por %p109_p2, %p108_p1 }
   0x9   :  { %p111_p4 = pnand %p110_p3, %p104_p0 }
   0xb   :  { %114 = shalt.err (!%p111_p4)
}
   0xc   :  { %21 = dma.hbm_to_vmem [thread:$0]  %s196_s0, 128, %s19_s13, [#allocation4]  }
   0xd   :  { %s123_s19 = scalar_lea.vmem %s29_s15, 128  ;;  %p128_p6 = scmp.lt.s32.totalorder %s29_s15, %s29_s15 }
   0xe   :  { %p124_p5 = scmp.ne.s32.totalorder %s29_s15, %s123_s19  ;;  %p129_p7 = scmp.lt.s32.totalorder %s123_s19, %s123_s19 }
  0x10   :  { %p130_p8 = por %p129_p7, %p128_p6 }
  0x12   :  { %p131_p9 = pnand %p130_p8, %p124_p5 }
  0x14   :  { %134 = shalt.err (!%p131_p9)
}
  0x15   :  { %31 = dma.hbm_to_vmem [thread:$0]  %s197_s1, 128, %s29_s15, [#allocation7]  }
  0x16   :  { %155 = dma.done.wait [#allocation4], 128  }
  0x17   :  { %156 = vsyncadd [#allocation4], 4294967168 }
  0x18   :  { %157 = dma.done.wait [#allocation7], 128  }
  0x19   :  { %158 = vsyncadd [#allocation7], 4294967168  ;;  %v40_v0 = vld [vmem:[#allocation3] sm:$0xff]  ;;  %v41_v1 = vld [vmem:[#allocation6] sm:$0xff]  ;;  %v60_v17 = vstv %s198_s2  ;;  %s163_s22 = smov [#allocation8]  }
  0x1a   :  { %v49_v2 = vrot.slane %v41_v1, 4  ;;  %v42_v3 = vmul.f32 %v41_v1, %v40_v0  ;;  %s75_s23 = sshll.u32 %s163_s22, 4  ;;  %s76_s23 = int_to_ptr.vmem [resolvable:$true] %s75_s23 }
  0x1b   :  { %s135_s24 = scalar_lea.vmem %s76_s23, 16  ;;  %s139_s25 = scalar_lea.vmem %s76_s23, 32 }
  0x1c   :  { %v50_v4 = vadd.f32 %v49_v2, %v41_v1  ;;  %v43_v6 = vrot.slane %v42_v3, 4  ;;  %p136_p10 = scmp.ne.s32.totalorder %s76_s23, %s135_s24  ;;  %p140_p11 = scmp.lt.s32.totalorder %s76_s23, %s76_s23 }
  0x1d   :  { %p141_p12 = scmp.lt.s32.totalorder %s139_s25, %s135_s24 }
  0x1e   :  { %v51_v5 = vrot.slane %v50_v4, 2  ;;  %v44_v9 = vadd.f32 %v43_v6, %v42_v3 }
  0x1f   :  { %p142_p13 = por %p141_p12, %p140_p11 }
  0x20   :  { %v52_v7 = vadd.f32 %v51_v5, %v50_v4  ;;  %v45_v11 = vrot.slane %v44_v9, 2 }
  0x21   :  { %p143_p0 = pnand %p142_p13, %p136_p10 }
  0x22   :  { %v53_v8 = vrot.slane %v52_v7, 1  ;;  %v46_v13 = vadd.f32 %v45_v11, %v44_v9 }
  0x24   :  { %v54_v10 = vadd.f32 %v53_v8, %v52_v7  ;;  %v47_v14 = vrot.slane %v46_v13, 1 }
  0x26   :  { %vm55_vm0 = vcmp.gt.f32.partialorder %v54_v10, 0.0  ;;  %v48_v15 = vadd.f32 %v47_v14, %v46_v13 }
  0x27   :  { %v56_v12 = vsel %vm55_vm0, %v54_v10, 1.0 }
  0x28   :  { %89 = vrcp.f32 %v56_v12 }
  0x35   :  { %v90_v16 = vpop.eup %89 }
  0x36   :  { %v58_v18 = vmul.f32 %v90_v16, %v48_v15 }
  0x38   :  { %v61_v19 = vadd.f32 %v60_v17, %v58_v18 }
  0x3a   :  { %v85_v20 = vmul.f32 -1.442695, %v61_v19 }
  0x3c   :  { %91 = vpow2.f32 %v85_v20 }
  0x49   :  { %v92_v21 = vpop.eup %91 }
  0x4a   :  { %v65_v22 = vadd.f32 1.0, %v92_v21 }
  0x4c   :  { %93 = vrcp.f32 %v65_v22 }
  0x59   :  { %v94_v23 = vpop.eup %93 }
  0x5a   :  { %68 = vst [vmem:[#allocation8] sm:$0x1] %v94_v23 }
  0x5b   :  { %146 = shalt.err (!%p143_p0)
}
  0x5c   :  { %78 = dma.vmem_to_hbm [thread:$0]  %s76_s23, 16, %s199_s3, [#allocation5]  }
  0x5d   :  { %159 = dma.done.wait [#allocation5], 16  }
  0x5e   :  { %160 = vsyncadd [#allocation5], 4294967280 }
  0x5f   :  { %82 = vsyncpa [#allocation4], 1 }
  0x60   :  { %83 = vsyncpa [#allocation7], 1 }
  0x61   :  { %84 = vsyncpa [#allocation5], 1 }

</bundles_post_ra>
